<compile_context>
chip_gen: v5e
topology: v5e:2x2
jax: 0.10.0
libtpu: 0.0.40
codegen_flags: <defaults>
</compile_context>

<pallas_src>
import functools
import math

import jax
import jax.numpy as jnp
from jax.experimental import pallas as pl
from jax.experimental.pallas import tpu as pltpu


_MIB = 1024 * 1024
# Generation-safe VMEM numbers (v7x has only 64 MiB per TensorCore, v5e/v6e
# have 128 MiB): budget for estimated live tile bytes, and the scoped limit
# handed to the compiler (kept under v7x's 64 MiB physical).
_VMEM_TILE_BUDGET = 40 * _MIB
_VMEM_LIMIT_BYTES = 56 * _MIB
_PER_STEP_IO_TARGET = 16 * _MIB   # input + output tile bytes per grid step


def _round_up(a, b):
    return ((a + b - 1) // b) * b


def _rmsnorm_kernel(x_ref, scale_ref, o_ref, *, eps, inv_sqrt_d, partial_size, d):
    x = x_ref[...].astype(jnp.float32)                      # (block_rows, d)
    if partial_size is None or partial_size == d:
        sq = x * x
    else:
        # (1, d) iota mask broadcasts in-vreg for free; avoids a full-tile
        # int32 temporary and a slice that could cut an (8,128) tile boundary.
        col = jax.lax.broadcasted_iota(jnp.int32, (1, d), 1)
        sq = jnp.where(col < partial_size, x * x, 0.0)
    sumsq = jnp.sum(sq, axis=-1, keepdims=True)             # (block_rows, 1)
    rms = jnp.sqrt(sumsq) * inv_sqrt_d
    # Exact reciprocal (VPU divide) keeps the 1e-5 reference tolerance; only
    # block_rows values per tile, so the cost is negligible. approx=True would
    # use the EUP vrcp but carries ~1e-4 relative error.
    inv = pl.reciprocal(rms + eps, approx=False)
    scale = scale_ref[...].astype(jnp.float32)              # (1, d), resident
    o_ref[...] = (scale * (x * inv)).astype(o_ref.dtype)


def _pick_block_rows(rows, d, itemsize):
    """Largest row tile that fits the (generation-safe) VMEM budget."""
    # Minimum sublane multiple per dtype packing (f32: 8, bf16: 16, int8/fp8: 32).
    min_sub = {4: 8, 2: 16, 1: 32}.get(itemsize, 8)
    # Estimated live VMEM bytes per tile row:
    #   double-buffered input tile  : 2 * d * itemsize
    #   double-buffered output tile : 2 * d * itemsize
    #   in-kernel f32 temporaries   : ~12 B/elem (f32 upcast, square, pre-cast result)
    bytes_per_row = d * (4 * itemsize + 12)
    block_rows = _VMEM_TILE_BUDGET // max(bytes_per_row, 1)
    # Bytes-based cap on per-step DMA volume: past ~16 MiB in+out per step the
    # ~0.35 us fixed per-step overhead is already <1%, bigger tiles only burn VMEM.
    io_cap = _PER_STEP_IO_TARGET // max(2 * d * itemsize, 1)
    block_rows = min(block_rows, io_cap)
    block_rows = max(min_sub, (block_rows // min_sub) * min_sub)
    # Never bigger than the (sublane-rounded) problem.
    block_rows = min(block_rows, _round_up(rows, min_sub))
    # Aim for >= 4 grid steps when rows allow: 2 TensorCores (v7x megacore)
    # x 2 steps each, so both cores keep a double-buffered pipeline.
    min_steps = 4
    if rows >= min_steps * min_sub:
        per_step = _round_up(pl.cdiv(rows, min_steps), min_sub)
        block_rows = min(block_rows, per_step)
    return max(block_rows, min_sub)


def rmsnorm(x, scale, *, eps=1e-8, p=-1.0, block_rows=None):
    """RMSNorm forward. x: (..., dim), scale: (dim,). Bias term disabled (default)."""
    orig_shape = x.shape
    d = orig_shape[-1]
    rows = int(math.prod(orig_shape[:-1])) if len(orig_shape) > 1 else 1
    x2 = x.reshape(rows, d)
    scale2 = scale.reshape(1, d)

    if p < 0.0 or p > 1.0:
        partial_size = None
        d_x = d
    else:
        partial_size = int(d * p)
        if partial_size <= 0:
            raise ValueError(
                f"partial RMSNorm with p={p} gives int(d*p)={partial_size}; "
                "the reference would divide by zero.")
        d_x = partial_size

    itemsize = jnp.dtype(x.dtype).itemsize
    if block_rows is None:
        block_rows = _pick_block_rows(rows, d, itemsize)

    # Ragged rows handled by the grid itself: the tail block's out-of-bounds
    # rows are only read/written inside that block (the reduction is per-row)
    # and Pallas masks the out-of-bounds writeback, so valid rows stay exact
    # with no host-side pad/slice round-trip through HBM. (Garbage tail rows
    # may produce inf/NaN locally; they are never written back.)
    grid = (pl.cdiv(rows, block_rows),)

    kernel = functools.partial(
        _rmsnorm_kernel,
        eps=float(eps),
        inv_sqrt_d=float(d_x) ** -0.5,
        partial_size=partial_size,
        d=d,
    )

    out = pl.pallas_call(
        kernel,
        out_shape=jax.ShapeDtypeStruct((rows, d), x.dtype),
        grid=grid,
        in_specs=[
            pl.BlockSpec((block_rows, d), lambda i: (i, 0)),
            pl.BlockSpec((1, d), lambda i: (0, 0)),   # scale stays resident
        ],
        out_specs=pl.BlockSpec((block_rows, d), lambda i: (i, 0)),
        compiler_params=pltpu.CompilerParams(
            dimension_semantics=("parallel",),
            vmem_limit_bytes=_VMEM_LIMIT_BYTES,
        ),
    )(x2, scale2)

    return out.reshape(orig_shape)


def rmsnorm_ref(x, scale, *, eps=1e-8, p=-1.0):
    """Pure-JAX reference mirroring the PyTorch forward."""
    d = x.shape[-1]
    xf = x.astype(jnp.float32)
    if p < 0.0 or p > 1.0:
        norm_x = jnp.sqrt(jnp.sum(xf * xf, axis=-1, keepdims=True))
        d_x = d
    else:
        ps = int(d * p)
        xp = xf[..., :ps]
        norm_x = jnp.sqrt(jnp.sum(xp * xp, axis=-1, keepdims=True))
        d_x = ps
    rms_x = norm_x * (float(d_x) ** -0.5)
    x_normed = xf / (rms_x + eps)
    return (scale.astype(jnp.float32) * x_normed).astype(x.dtype)


if __name__ == "__main__":
    # Module config: dim=32, p=-1.0 (full RMSNorm), eps=1e-8, bias=False.
    dim = 32
    batch, seq = 2, 8

    key = jax.random.PRNGKey(0)
    k1, k2 = jax.random.split(key)
    x = jax.random.normal(k1, (batch, seq, dim), dtype=jnp.float32)
    scale = jnp.ones((dim,), dtype=jnp.float32)  # torch.ones(dim) init

    out = jax.block_until_ready(rmsnorm(x, scale, eps=1e-8, p=-1.0))
    ref = rmsnorm_ref(x, scale, eps=1e-8, p=-1.0)
    assert out.shape == x.shape and out.dtype == x.dtype
    assert jnp.allclose(out, ref, atol=1e-5, rtol=1e-5)

    # Ragged rows: 15 rows with an 8-row tile -> 2 grid steps, tail block
    # masked on writeback (exercises the no-padding cdiv path).
    x_r = jax.random.normal(k2, (3, 5, dim), dtype=jnp.float32)
    out_r = jax.block_until_ready(rmsnorm(x_r, scale, eps=1e-8, p=-1.0, block_rows=8))
    assert jnp.allclose(out_r, rmsnorm_ref(x_r, scale, eps=1e-8, p=-1.0),
                        atol=1e-5, rtol=1e-5)

    # Partial RMSNorm: p=0.5 -> norm over the first int(32*0.5)=16 columns.
    out_p = jax.block_until_ready(rmsnorm(x, scale, eps=1e-8, p=0.5))
    assert jnp.allclose(out_p, rmsnorm_ref(x, scale, eps=1e-8, p=0.5),
                        atol=1e-5, rtol=1e-5)

    print("KERNEL_OK")
</pallas_src>

<mosaic_0001>
module attributes {stable_mosaic.version = 11 : i64} {
  func.func @_rmsnorm_kernel(%arg0: i32, %arg1: memref<16x32xf32, #tpu.memory_space<vmem>>, %arg2: memref<1x32xf32, #tpu.memory_space<vmem>>, %arg3: memref<16x32xf32, #tpu.memory_space<vmem>>) attributes {dimension_semantics = [#tpu.dimension_semantics<parallel>], iteration_bounds = array<i64: 1>, scalar_prefetch = 0 : i64, scratch_operands = 0 : i64, tpu.core_type = #tpu.core_type<tc>, window_params = [{transform_indices = @transform_0, window_bounds = array<i64: 16, 32>}, {pipeline_mode = #tpu.pipeline_mode<synchronous>, transform_indices = @transform_1, window_bounds = array<i64: 1, 32>}, {transform_indices = @transform_2, window_bounds = array<i64: 16, 32>}]} {
    %c0 = arith.constant 0 : index
    %c0_0 = arith.constant 0 : index
    %0 = vector.load %arg1[%c0, %c0_0] : memref<16x32xf32, #tpu.memory_space<vmem>>, vector<16x32xf32>
    %1 = arith.mulf %0, %0 : vector<16x32xf32>
    %cst = arith.constant dense<0.000000e+00> : vector<16xf32>
    %2 = vector.multi_reduction <add>, %1, %cst [1] : vector<16x32xf32> to vector<16xf32>
    %3 = vector.shape_cast %2 : vector<16xf32> to vector<16x1xf32>
    %4 = math.sqrt %3 : vector<16x1xf32>
    %cst_1 = arith.constant 0.176776692 : f32
    %5 = vector.broadcast %cst_1 : f32 to vector<16x1xf32>
    %6 = arith.mulf %4, %5 : vector<16x1xf32>
    %cst_2 = arith.constant 9.99999993E-9 : f32
    %7 = vector.broadcast %cst_2 : f32 to vector<16x1xf32>
    %8 = arith.addf %6, %7 : vector<16x1xf32>
    %9 = tpu.reciprocal %8 : vector<16x1xf32> -> vector<16x1xf32>
    %c0_3 = arith.constant 0 : index
    %c0_4 = arith.constant 0 : index
    %10 = vector.load %arg2[%c0_3, %c0_4] : memref<1x32xf32, #tpu.memory_space<vmem>>, vector<1x32xf32>
    %11 = vector.broadcast %9 : vector<16x1xf32> to vector<16x32xf32>
    %12 = arith.mulf %0, %11 : vector<16x32xf32>
    %13 = vector.broadcast %10 : vector<1x32xf32> to vector<16x32xf32>
    %14 = arith.mulf %13, %12 : vector<16x32xf32>
    %c0_5 = arith.constant 0 : index
    %c0_6 = arith.constant 0 : index
    %15 = vector.load %arg3[%c0_5, %c0_6] : memref<16x32xf32, #tpu.memory_space<vmem>>, vector<16x32xf32>
    tpu.vector_store %arg3[%c0_5, %c0_6], %14 {strides = array<i32>} : memref<16x32xf32, #tpu.memory_space<vmem>>, vector<16x32xf32>,
    return
  }
  func.func @transform_0(%arg0: i32) -> (i32, i32) {
    %c0_i32 = arith.constant 0 : i32
    %c0_i32_0 = arith.constant 0 : i32
    return %arg0, %c0_i32 : i32, i32
  }
  func.func @transform_1(%arg0: i32) -> (i32, i32) {
    %c0_i32 = arith.constant 0 : i32
    %c0_i32_0 = arith.constant 0 : i32
    %c0_i32_1 = arith.constant 0 : i32
    return %c0_i32, %c0_i32_0 : i32, i32
  }
  func.func @transform_2(%arg0: i32) -> (i32, i32) {
    %c0_i32 = arith.constant 0 : i32
    %c0_i32_0 = arith.constant 0 : i32
    return %arg0, %c0_i32 : i32, i32
  }
}

</mosaic_0001>

<bundles_post_ra>
// kernel: tpu_custom_call.1
= control target key start
LH: loop header
LB: loop body
LE: loop exit
PB: predicated region body
PF: predicated region fallthrough
CT: control target
= control target key end

     0   :  { %7 = vsyncpa [#allocation3], 0  ;;  %s275_s0 = inlined_call_operand.hbm [shape: f32[16,32], index: 0, kind: input, shape index: {}]   ;;  %s276_s1 = inlined_call_operand.hbm [shape: f32[1,32], index: 1, kind: input, shape index: {}]   ;;  %s277_s2 = inlined_call_operand.hbm [shape: f32[16,32], index: 2, kind: output, shape index: {}]  }
   0x1   :  { %8 = vsyncpa [#allocation6], 0 }
   0x2   :  { %9 = vsyncpa [#allocation4], 0  ;;  %s14_s11 = sshll.u32 %s275_s0, 4  ;;  %s231_s12 = smov [#allocation2]   ;;  %s15_s11 = int_to_ptr.hbm [resolvable:$true] %s14_s11 }
   0x3   :  { %s16_s13 = sshll.u32 %s231_s12, 4  ;;  %s28_s16 = sshll.u32 %s276_s1, 4  ;;  %s17_s13 = int_to_ptr.vmem [resolvable:$true] %s16_s13  ;;  %s29_s16 = int_to_ptr.hbm [resolvable:$true] %s28_s16 }
   0x4   :  { %s232_s17 = smov 128   ;;  %s233_s18 = smov 8  }
   0x5   :  { %22 = dma.hbm_to_vmem [thread:$0]  %s15_s11, 256, %s17_s13, [#allocation3], %s232_s17, %s232_s17, %s233_s18  }
   0x6   :  { %s234_s19 = smov [#allocation5]  }
   0x7   :  { %s30_s20 = sshll.u32 %s234_s19, 4  ;;  %s31_s20 = int_to_ptr.vmem [resolvable:$true] %s30_s20 }
   0x8   :  { %33 = dma.hbm_to_vmem [thread:$0]  %s29_s16, 16, %s31_s20, [#allocation6]  }
   0x9   :  { %225 = dma.done.wait [#allocation3], 256  }
   0xa   :  { %226 = vsyncadd [#allocation3], 4294967040 }
   0xb   :  { %227 = dma.done.wait [#allocation6], 16  }
   0xc   :  { %228 = vsyncadd [#allocation6], 4294967280  ;;  %v42_v0 = vld [vmem:[#allocation2] sm:$0xff]  ;;  %vm46_vm0 = vcmask 261120   ;;  %v260_v2 = vld [vmem:[#allocation2 + $0x8] sm:$0xff]  ;;  %s235_s0 = smov [#allocation7]  }
   0xd   :  { %v44_v1 = vmul.f32 %v42_v0, %v42_v0  ;;  %v45_v4 = vmul.f32 %v260_v2, %v260_v2  ;;  %v144_v43 = vld [vmem:[#allocation5] ss:$0 sm:$0xff]  ;;  %s123_s1 = sshll.u32 %s235_s0, 4  ;;  %s125_s23 = sshll.u32 %s277_s2, 4  ;;  %s124_s1 = int_to_ptr.vmem [resolvable:$true] %s123_s1  ;;  %s126_s23 = int_to_ptr.hbm [resolvable:$true] %s125_s23 }
   0xf   :  { %v47_v3 = vsel %vm46_vm0, %v44_v1, 0.0  ;;  %v50_v5 = vsel %vm46_vm0, %v45_v4, 0.0 }
  0x10   :  { %48 = vadd.xlane.f32.xlu0 %v47_v3 }
  0x18   :  { %51 = vadd.xlane.f32.xlu0 %v50_v5 }
  0x83   :  { %v49_v6 = vpop.xlane.xlu0 %48 }
  0x84   :  { %145 = vrsqrt.f32 %v49_v6  ;;  %vm60_vm1 = vcmp.eq.f32.partialorder %v49_v6, inf  ;;  %v63_v18 = vand.u32 2147483648, %v49_v6  ;;  %vm62_vm2 = vcmp.eq.f32.partialorder %v49_v6, 0.0 }
  0x8a   :  { %v146_v7 = vpop.eup %145 }
  0x8b   :  { %v54_v8 = vmul.f32 %v146_v7, %v49_v6  ;;  %v52_v9 = vpop.xlane.xlu0 %51 }
  0x8c   :  { %147 = vrsqrt.f32 %v52_v9  ;;  %vm72_vm3 = vcmp.eq.f32.partialorder %v52_v9, inf  ;;  %v75_v27 = vand.u32 2147483648, %v52_v9  ;;  %vm74_vm4 = vcmp.eq.f32.partialorder %v52_v9, 0.0 }
  0x8d   :  { %v55_v10 = vmul.f32 %v146_v7, %v54_v8 }
  0x8f   :  { %v56_v11 = vmul.f32 0.5, %v55_v10 }
  0x91   :  { %v57_v12 = vsub.f32 1.5, %v56_v11 }
  0x92   :  { %v148_v13 = vpop.eup %147 }
  0x93   :  { %v58_v14 = vmul.f32 %v146_v7, %v57_v12  ;;  %v66_v15 = vmul.f32 %v148_v13, %v52_v9 }
  0x95   :  { %v59_v16 = vmul.f32 %v58_v14, %v49_v6  ;;  %v67_v17 = vmul.f32 %v148_v13, %v66_v15 }
  0x97   :  { %v61_v19 = vsel %vm60_vm1, %v49_v6, %v59_v16  ;;  %v68_v20 = vmul.f32 0.5, %v67_v17 }
  0x98   :  { %v64_v21 = vsel %vm62_vm2, %v63_v18, %v61_v19 }
  0x99   :  { %v77_v22 = vmul.f32 0.17677669, %v64_v21  ;;  %v69_v23 = vsub.f32 1.5, %v68_v20 }
  0x9b   :  { %v79_v24 = vadd.f32 1e-08, %v77_v22  ;;  %v70_v25 = vmul.f32 %v148_v13, %v69_v23 }
  0x9d   :  { %149 = vrcp.f32 %v79_v24  ;;  %v71_v26 = vmul.f32 %v70_v25, %v52_v9  ;;  %v92_v35 = vand.u32 2147483648, %v79_v24  ;;  %v90_v37 = vand.u32 2147483647, %v79_v24 }
  0x9e   :  { %vm86_vm6 = vweird.f32 %v79_v24 }
  0x9f   :  { %v73_v28 = vsel %vm72_vm3, %v52_v9, %v71_v26  ;;  %v93_v40 = vor.u32 1.1754944e-38, %v92_v35  ;;  %vm91_vm8 = vcmp.eq.f32.partialorder %v90_v37, 8.507059e+37 }
  0xa0   :  { %v76_v29 = vsel %vm74_vm4, %v75_v27, %v73_v28 }
  0xa1   :  { %v78_v30 = vmul.f32 0.17677669, %v76_v29 }
  0xa3   :  { %v150_v31 = vpop.eup %149  ;;  %v80_v32 = vadd.f32 1e-08, %v78_v30 }
  0xa4   :  { %v82_v33 = vmul.f32 %v150_v31, %v79_v24  ;;  %vm87_vm5 = vweird.f32 %v150_v31 }
  0xa5   :  { %151 = vrcp.f32 %v80_v32  ;;  %vm88_vm7 = vmor %vm86_vm6, %vm87_vm5  ;;  %v106_v47 = vand.u32 2147483648, %v80_v32  ;;  %v104_v49 = vand.u32 2147483647, %v80_v32  ;;  %vm100_vm10 = vweird.f32 %v80_v32 }
  0xa6   :  { %v83_v34 = vsub.f32 1.0, %v82_v33 }
  0xa7   :  { %v107_v52 = vor.u32 1.1754944e-38, %v106_v47  ;;  %vm105_vm12 = vcmp.eq.f32.partialorder %v104_v49, 8.507059e+37 }
  0xa8   :  { %v84_v36 = vmul.f32 %v150_v31, %v83_v34 }
  0xaa   :  { %v85_v38 = vadd.f32 %v150_v31, %v84_v36 }
  0xab   :  { %v152_v39 = vpop.eup %151 }
  0xac   :  { %v89_v41 = vsel %vm88_vm7, %v150_v31, %v85_v38  ;;  %v96_v42 = vmul.f32 %v152_v39, %v80_v32  ;;  %vm101_vm9 = vweird.f32 %v152_v39 }
  0xad   :  { %v94_v44 = vsel %vm91_vm8, %v93_v40, %v89_v41  ;;  %vm102_vm11 = vmor %vm100_vm10, %vm101_vm9 }
  0xae   :  { %v97_v45 = vsub.f32 1.0, %v96_v42  ;;  %v110_v46 = vmul.f32 %v94_v44, %v42_v0 }
  0xb0   :  { %v98_v48 = vmul.f32 %v152_v39, %v97_v45  ;;  %v115_v50 = vmul.f32 %v144_v43, %v110_v46 }
  0xb2   :  { %v99_v51 = vadd.f32 %v152_v39, %v98_v48  ;;  %117 = vst.msk [vmem:[#allocation7] sm:$0xff] %vm46_vm0, %v115_v50 }
  0xb4   :  { %v103_v53 = vsel %vm102_vm11, %v152_v39, %v99_v51 }
  0xb5   :  { %v108_v54 = vsel %vm105_vm12, %v107_v52, %v103_v53 }
  0xb6   :  { %v111_v55 = vmul.f32 %v108_v54, %v260_v2 }
  0xb8   :  { %v116_v56 = vmul.f32 %v144_v43, %v111_v55 }
  0xba   :  { %118 = vst.msk [vmem:[#allocation7 + $0x8] sm:$0xff] %vm46_vm0, %v116_v56 }
  0xbb   :  { %131 = dma.vmem_to_hbm [thread:$0]  %s124_s1, 256, %s126_s23, [#allocation4], %s232_s17, %s232_s17, %s233_s18  }
  0xbc   :  { %229 = dma.done.wait [#allocation4], 256  }
  0xbd   :  { %230 = vsyncadd [#allocation4], 4294967040 }
  0xbe   :  { %136 = vsyncpa [#allocation3], 1 }
  0xbf   :  { %137 = vsyncpa [#allocation6], 1 }
  0xc0   :  { %138 = vsyncpa [#allocation4], 1 }

</bundles_post_ra>
